<compile_context>
chip_gen: v7x
topology: tpu7x:2x2x1
jax: 0.10.0
libtpu: 0.0.40
codegen_flags: <defaults>
</compile_context>

<pallas_src>
import jax
import jax.numpy as jnp
import numpy as np
from jax.experimental import pallas as pl
from jax.experimental.pallas import tpu as pltpu


# ----------------------------------------------------------------------------
# One-time weight lowering (wrapper side, plain JAX).
# ----------------------------------------------------------------------------
def _lower_conv_rhs(w, b, w_in):
    """Lower an OIHW (O, C, 3, 3) stride-2 pad-1 conv to a single RHS matrix
    of shape (3*w_in*C + 1, (w_in//2)*O).

    Row layout matches a per-output-row LHS of [row 2i-1 | row 2i | row 2i+1]
    (each input row flattened (w, c) channel-minor); the last row carries the
    bias, picked up by a constant-1 LHS column.  The kw taps, the stride-2
    column subsampling and the left/right zero padding are folded in:
      RHS[kh*w_in*C + s*C + c, j*O + o] = w[o, c, kh, kw]  where s == 2j+kw-1.
    """
    c_out, c_in = w.shape[0], w.shape[1]
    w_out = w_in // 2
    s_idx = jnp.arange(w_in)[:, None]
    j_idx = jnp.arange(w_out)[None, :]
    mats = []
    for kh in range(3):
        m = jnp.zeros((w_in * c_in, w_out * c_out), jnp.float32)
        for kw in range(3):
            sel = (s_idx == 2 * j_idx + kw - 1).astype(jnp.float32)   # (w_in, w_out)
            m = m + jnp.kron(sel, w[:, :, kh, kw].T)                  # (w_in*C, w_out*O)
        mats.append(m)
    bias_row = jnp.tile(b, (w_out,))[None, :]                         # idx = j*O + o
    return jnp.concatenate(mats + [bias_row], axis=0)


def prepare_encoder(params, image_size):
    """One-time transform of PyTorch-layout params into fused-kernel form."""
    prep = {"conv_rhs": []}
    w_in = image_size
    c_last = None
    for layer in params["convs"]:
        w, b = layer["w"], layer["b"]
        prep["conv_rhs"].append(_lower_conv_rhs(w, b, w_in).astype(jnp.bfloat16))
        w_in //= 2
        c_last = w.shape[0]
    h_last = w_last = w_in

    # fc: permute columns from PyTorch (c, h, w) flatten order to the kernel's
    # (h, w, c) flatten order, append the bias as the last RHS row.
    fc_w, fc_b = params["fc"]["w"], params["fc"]["b"]
    fc_dim = fc_w.shape[0]
    wfc = fc_w.reshape(fc_dim, c_last, h_last, w_last).transpose(2, 3, 1, 0)
    wfc = wfc.reshape(h_last * w_last * c_last, fc_dim)
    prep["fc_rhs"] = jnp.concatenate([wfc, fc_b[None, :]], axis=0).astype(jnp.bfloat16)

    # Fused mu / log_var heads: one (fc_dim + 1, 2*latent) RHS (bias row last).
    wh = jnp.concatenate([params["fc_mu"]["w"], params["fc_log_var"]["w"]], axis=0).T
    bh = jnp.concatenate([params["fc_mu"]["b"], params["fc_log_var"]["b"]])[None, :]
    prep["head_rhs"] = jnp.concatenate([wh, bh], axis=0).astype(jnp.bfloat16)
    return prep


# ----------------------------------------------------------------------------
# The fused Pallas kernel.
# ----------------------------------------------------------------------------
def _make_encoder_kernel(n, h0, n_conv):
    f32, bf16 = jnp.float32, jnp.bfloat16

    def with_bias_col(m):
        # Constant-1 trailing column; picks up the bias row folded into each RHS.
        return jnp.concatenate([m, jnp.ones((m.shape[0], 1), m.dtype)], axis=-1)

    def kernel(*refs):
        x_ref = refs[0]
        conv_refs = refs[1:1 + n_conv]
        fc_ref, head_ref, out_ref = refs[1 + n_conv:]

        # Activations: (batch*rows, width*channels), channel-minor.  The row
        # plumbing (shifts / slices / concats) is kept in f32 (simplest,
        # unpacked layouts); every matmul gets bf16 operands + f32 accumulate.
        a = x_ref[...].astype(f32)
        h_in = h0
        for l in range(n_conv):
            k_in = a.shape[1]
            m_in, h_out = n * h_in, h_in // 2
            zrow = jnp.zeros((1, k_in), f32)
            down = jnp.concatenate([zrow, a[:-1]], axis=0)      # row p -> a[p-1]
            up = jnp.concatenate([a[1:], zrow], axis=0)         # row p -> a[p+1]
            # a[p-1] crosses the image top at the first row of every image.
            p_ids = jax.lax.broadcasted_iota(jnp.int32, (m_in, 1), 0)
            down = jnp.where((p_ids % h_in) == 0, 0.0, down)
            # 3-row neighbourhood [row 2i-1 | row 2i | row 2i+1] per row.
            neigh = jnp.concatenate([down, a, up], axis=-1)     # (m_in, 3*k_in)
            # Keep only rows p = 2i (stride-2 over rows) -> LHS rows are
            # (batch, out_row) ordered; M = batch*out_rows.
            lhs = jnp.concatenate(
                [neigh[b * h_in + 2 * i: b * h_in + 2 * i + 1]
                 for b in range(n) for i in range(h_out)], axis=0)
            # ONE MXU matmul per conv layer: M = n*h_out, K = 3*W*C_in (+1 bias),
            # N = W_out*C_out; taps/stride/pad/bias folded into the lowered RHS.
            acc = jnp.dot(with_bias_col(lhs).astype(bf16), conv_refs[l][...],
                          preferred_element_type=f32)
            a = jnp.maximum(acc, 0.0)                           # (n*h_out, W_out*C_out)
            h_in = h_out

        # Flatten to (batch, H*W*C) in (h, w, c) order (fc weights were permuted
        # from PyTorch's (c, h, w) flatten order at prepare time) -> ONE fc dot
        # with a lane-dense K = H*W*C.
        x_flat = jnp.concatenate(
            [jnp.concatenate([a[b * h_in + j: b * h_in + j + 1]
                              for j in range(h_in)], axis=-1)
             for b in range(n)], axis=0)                        # (n, H*W*C)
        x_fc = jnp.maximum(
            jnp.dot(with_bias_col(x_flat).astype(bf16), fc_ref[...],
                    preferred_element_type=f32), 0.0)           # (n, fc_dim)
        # Fused mu / log_var heads -> single (n, 2*latent) store.
        heads = jnp.dot(with_bias_col(x_fc).astype(bf16), head_ref[...],
                        preferred_element_type=f32)
        out_ref[...] = heads

    return kernel


def encoder_forward(prep, x):
    """x: (N, C, H, W) float32 (PyTorch NCHW) -> (mu, log_var)."""
    n, c0, h0, w0 = x.shape
    latent = prep["head_rhs"].shape[1] // 2
    n_conv = len(prep["conv_rhs"])

    # Single cheap relayout of the (tiny) network input: (batch*row, w*c),
    # channel-minor, bf16 -> dense sublane/lane tiles and half the input DMA.
    x_rows = x.transpose(0, 2, 3, 1).reshape(n * h0, w0 * c0).astype(jnp.bfloat16)

    inputs = [x_rows, *prep["conv_rhs"], prep["fc_rhs"], prep["head_rhs"]]
    vmem = lambda: pl.BlockSpec(memory_space=pltpu.MemorySpace.VMEM)
    heads = pl.pallas_call(
        _make_encoder_kernel(n, h0, n_conv),
        out_shape=jax.ShapeDtypeStruct((n, 2 * latent), jnp.float32),
        in_specs=[vmem() for _ in inputs],
        out_specs=vmem(),
    )(*inputs)
    # mu / log_var split is a free wrapper-side lane slice.
    return heads[:, :latent], heads[:, latent:]


# ----------------------------------------------------------------------------
# Parameter init (deterministic, PyTorch-like uniform fan-in scaling).
# ----------------------------------------------------------------------------
def init_encoder_params(key, image_size, input_dim, conv_dims, fc_dim, latent_dim):
    params = {"convs": []}
    prev = input_dim
    for cd in conv_dims:
        key, k1, k2 = jax.random.split(key, 3)
        bound = 1.0 / float(np.sqrt(prev * 9))
        params["convs"].append({
            "w": jax.random.uniform(k1, (cd, prev, 3, 3), jnp.float32, -bound, bound),
            "b": jax.random.uniform(k2, (cd,), jnp.float32, -bound, bound),
        })
        prev = cd

    flat_dim = (image_size // 2 ** len(conv_dims)) ** 2 * conv_dims[-1]

    def lin(key, in_d, out_d):
        k1, k2 = jax.random.split(key)
        bound = 1.0 / float(np.sqrt(in_d))
        return {"w": jax.random.uniform(k1, (out_d, in_d), jnp.float32, -bound, bound),
                "b": jax.random.uniform(k2, (out_d,), jnp.float32, -bound, bound)}

    key, kf, km, kv = jax.random.split(key, 4)
    params["fc"] = lin(kf, flat_dim, fc_dim)
    params["fc_mu"] = lin(km, fc_dim, latent_dim)
    params["fc_log_var"] = lin(kv, fc_dim, latent_dim)
    return params


# ----------------------------------------------------------------------------
# Pure-JAX reference (matches the PyTorch module) for a correctness check.
# ----------------------------------------------------------------------------
def encoder_reference(params, x):
    y = x
    for layer in params["convs"]:
        y = jax.lax.conv_general_dilated(
            y, layer["w"], window_strides=(2, 2), padding=((1, 1), (1, 1)),
            dimension_numbers=("NCHW", "OIHW", "NCHW"))
        y = jnp.maximum(y + layer["b"][None, :, None, None], 0.0)
    y = y.reshape(y.shape[0], -1)
    y = jnp.maximum(y @ params["fc"]["w"].T + params["fc"]["b"], 0.0)
    mu = y @ params["fc_mu"]["w"].T + params["fc_mu"]["b"]
    lv = y @ params["fc_log_var"]["w"].T + params["fc_log_var"]["b"]
    return mu, lv


if __name__ == "__main__":
    image_size = 16
    input_dim = 4
    conv_dims = [8, 16]
    fc_dim = 32
    latent_dim = 8
    batch = 2

    key = jax.random.PRNGKey(0)
    key, kx = jax.random.split(key)
    x = jax.random.normal(kx, (batch, input_dim, image_size, image_size),
                          dtype=jnp.float32)
    params = init_encoder_params(key, image_size, input_dim, conv_dims,
                                 fc_dim, latent_dim)

    prep = prepare_encoder(params, image_size)       # one-time weight lowering
    fwd = jax.jit(encoder_forward)

    mu, log_var = fwd(prep, x)
    jax.block_until_ready((mu, log_var))
    assert mu.shape == (batch, latent_dim)
    assert log_var.shape == (batch, latent_dim)

    # Correctness vs. pure-JAX reference (bf16 operands, f32 accumulation).
    mu_ref, lv_ref = encoder_reference(params, x)
    np.testing.assert_allclose(np.asarray(mu), np.asarray(mu_ref),
                               atol=2e-2, rtol=2e-2)
    np.testing.assert_allclose(np.asarray(log_var), np.asarray(lv_ref),
                               atol=2e-2, rtol=2e-2)

    print("KERNEL_OK")
</pallas_src>

<mosaic_0001>
module attributes {stable_mosaic.version = 11 : i64} {
  func.func @kernel(%arg0: memref<32x64xbf16, #tpu.memory_space<vmem>>, %arg1: memref<193x64xbf16, #tpu.memory_space<vmem>>, %arg2: memref<193x64xbf16, #tpu.memory_space<vmem>>, %arg3: memref<257x32xbf16, #tpu.memory_space<vmem>>, %arg4: memref<33x16xbf16, #tpu.memory_space<vmem>>, %arg5: memref<2x16xf32, #tpu.memory_space<vmem>>) attributes {dimension_semantics = [], scalar_prefetch = 0 : i64, scratch_operands = 0 : i64, tpu.core_type = #tpu.core_type<tc>} {
    %c0 = arith.constant 0 : index
    %c0_0 = arith.constant 0 : index
    %0 = vector.load %arg0[%c0, %c0_0] : memref<32x64xbf16, #tpu.memory_space<vmem>>, vector<32x64xbf16>
    %1 = arith.extf %0 : vector<32x64xbf16> to vector<32x64xf32>
    %cst = arith.constant 0.000000e+00 : f32
    %2 = vector.broadcast %cst : f32 to vector<1x64xf32>
    %3 = vector.extract_strided_slice %1 {offsets = [0, 0], sizes = [31, 64], strides = [1, 1]} : vector<32x64xf32> to vector<31x64xf32>
    %4 = tpu.concatenate %2, %3 in 0 : vector<1x64xf32>, vector<31x64xf32> -> vector<32x64xf32>
    %5 = vector.extract_strided_slice %1 {offsets = [1, 0], sizes = [31, 64], strides = [1, 1]} : vector<32x64xf32> to vector<31x64xf32>
    %6 = tpu.concatenate %5, %2 in 0 : vector<31x64xf32>, vector<1x64xf32> -> vector<32x64xf32>
    %7 = tpu.iota {dimensions = array<i32: 0>} : vector<32x1xi32>
    %c16_i32 = arith.constant 16 : i32
    %c0_i32 = arith.constant 0 : i32
    %8 = arith.cmpi eq, %c16_i32, %c0_i32 : i32
    %c1_i32 = arith.constant 1 : i32
    %9 = arith.select %8, %c1_i32, %c16_i32 : i32
    %10 = vector.broadcast %9 : i32 to vector<32x1xi32>
    %11 = arith.remsi %7, %10 : vector<32x1xi32>
    %c0_i32_1 = arith.constant 0 : i32
    %12 = vector.broadcast %c0_i32_1 : i32 to vector<32x1xi32>
    %13 = arith.cmpi ne, %11, %12 : vector<32x1xi32>
    %c0_i32_2 = arith.constant 0 : i32
    %14 = vector.broadcast %c0_i32_2 : i32 to vector<32x1xi32>
    %15 = arith.cmpi slt, %11, %14 : vector<32x1xi32>
    %c0_i32_3 = arith.constant 0 : i32
    %16 = arith.cmpi slt, %9, %c0_i32_3 : i32
    %17 = vector.broadcast %16 : i1 to vector<32x1xi1>
    %18 = vector.broadcast %17 : vector<32x1xi1> to vector<32x1xi1>
    %19 = arith.xori %15, %18 : vector<32x1xi1>
    %20 = arith.andi %19, %13 : vector<32x1xi1>
    %21 = vector.broadcast %9 : i32 to vector<32x1xi32>
    %22 = arith.addi %11, %21 : vector<32x1xi32>
    %23 = arith.select %20, %22, %11 : vector<32x1xi1>, vector<32x1xi32>
    %c0_i32_4 = arith.constant 0 : i32
    %24 = vector.broadcast %c0_i32_4 : i32 to vector<32x1xi32>
    %25 = arith.cmpi eq, %23, %24 : vector<32x1xi32>
    %cst_5 = arith.constant 0.000000e+00 : f32
    %26 = vector.shape_cast %25 : vector<32x1xi1> to vector<32x1xi1>
    %27 = vector.broadcast %26 : vector<32x1xi1> to vector<32x64xi1>
    %28 = vector.broadcast %cst_5 : f32 to vector<32x64xf32>
    %29 = arith.select %27, %28, %4 : vector<32x64xi1>, vector<32x64xf32>
    %30 = tpu.concatenate %29, %1, %6 in 1 : vector<32x64xf32>, vector<32x64xf32>, vector<32x64xf32> -> vector<32x192xf32>
    %31 = vector.extract_strided_slice %30 {offsets = [0, 0], sizes = [1, 192], strides = [1, 1]} : vector<32x192xf32> to vector<1x192xf32>
    %32 = vector.extract_strided_slice %30 {offsets = [2, 0], sizes = [1, 192], strides = [1, 1]} : vector<32x192xf32> to vector<1x192xf32>
    %33 = vector.extract_strided_slice %30 {offsets = [4, 0], sizes = [1, 192], strides = [1, 1]} : vector<32x192xf32> to vector<1x192xf32>
    %34 = vector.extract_strided_slice %30 {offsets = [6, 0], sizes = [1, 192], strides = [1, 1]} : vector<32x192xf32> to vector<1x192xf32>
    %35 = vector.extract_strided_slice %30 {offsets = [8, 0], sizes = [1, 192], strides = [1, 1]} : vector<32x192xf32> to vector<1x192xf32>
    %36 = vector.extract_strided_slice %30 {offsets = [10, 0], sizes = [1, 192], strides = [1, 1]} : vector<32x192xf32> to vector<1x192xf32>
    %37 = vector.extract_strided_slice %30 {offsets = [12, 0], sizes = [1, 192], strides = [1, 1]} : vector<32x192xf32> to vector<1x192xf32>
    %38 = vector.extract_strided_slice %30 {offsets = [14, 0], sizes = [1, 192], strides = [1, 1]} : vector<32x192xf32> to vector<1x192xf32>
    %39 = vector.extract_strided_slice %30 {offsets = [16, 0], sizes = [1, 192], strides = [1, 1]} : vector<32x192xf32> to vector<1x192xf32>
    %40 = vector.extract_strided_slice %30 {offsets = [18, 0], sizes = [1, 192], strides = [1, 1]} : vector<32x192xf32> to vector<1x192xf32>
    %41 = vector.extract_strided_slice %30 {offsets = [20, 0], sizes = [1, 192], strides = [1, 1]} : vector<32x192xf32> to vector<1x192xf32>
    %42 = vector.extract_strided_slice %30 {offsets = [22, 0], sizes = [1, 192], strides = [1, 1]} : vector<32x192xf32> to vector<1x192xf32>
    %43 = vector.extract_strided_slice %30 {offsets = [24, 0], sizes = [1, 192], strides = [1, 1]} : vector<32x192xf32> to vector<1x192xf32>
    %44 = vector.extract_strided_slice %30 {offsets = [26, 0], sizes = [1, 192], strides = [1, 1]} : vector<32x192xf32> to vector<1x192xf32>
    %45 = vector.extract_strided_slice %30 {offsets = [28, 0], sizes = [1, 192], strides = [1, 1]} : vector<32x192xf32> to vector<1x192xf32>
    %46 = vector.extract_strided_slice %30 {offsets = [30, 0], sizes = [1, 192], strides = [1, 1]} : vector<32x192xf32> to vector<1x192xf32>
    %47 = tpu.concatenate %31, %32, %33, %34, %35, %36, %37, %38, %39, %40, %41, %42, %43, %44, %45, %46 in 0 : vector<1x192xf32>, vector<1x192xf32>, vector<1x192xf32>, vector<1x192xf32>, vector<1x192xf32>, vector<1x192xf32>, vector<1x192xf32>, vector<1x192xf32>, vector<1x192xf32>, vector<1x192xf32>, vector<1x192xf32>, vector<1x192xf32>, vector<1x192xf32>, vector<1x192xf32>, vector<1x192xf32>, vector<1x192xf32> -> vector<16x192xf32>
    %cst_6 = arith.constant 1.000000e+00 : f32
    %48 = vector.broadcast %cst_6 : f32 to vector<16x1xf32>
    %49 = tpu.concatenate %47, %48 in 1 : vector<16x192xf32>, vector<16x1xf32> -> vector<16x193xf32>
    %50 = arith.truncf %49 : vector<16x193xf32> to vector<16x193xbf16>
    %c0_7 = arith.constant 0 : index
    %c0_8 = arith.constant 0 : index
    %51 = vector.load %arg1[%c0_7, %c0_8] : memref<193x64xbf16, #tpu.memory_space<vmem>>, vector<193x64xbf16>
    %cst_9 = arith.constant dense<0.000000e+00> : vector<16x64xf32>
    %52 = tpu.matmul %50, %51, %cst_9 {dimension_numbers = #tpu.dot_dimension_numbers<[1], [0], [0], [1], [0, 0, 1, 1], [], []>} : vector<16x193xbf16>, vector<193x64xbf16>, vector<16x64xf32> -> vector<16x64xf32>
    %cst_10 = arith.constant 0.000000e+00 : f32
    %53 = vector.broadcast %cst_10 : f32 to vector<16x64xf32>
    %54 = arith.maximumf %52, %53 : vector<16x64xf32>
    %cst_11 = arith.constant 0.000000e+00 : f32
    %55 = vector.broadcast %cst_11 : f32 to vector<1x64xf32>
    %56 = vector.extract_strided_slice %54 {offsets = [0, 0], sizes = [15, 64], strides = [1, 1]} : vector<16x64xf32> to vector<15x64xf32>
    %57 = tpu.concatenate %55, %56 in 0 : vector<1x64xf32>, vector<15x64xf32> -> vector<16x64xf32>
    %58 = vector.extract_strided_slice %54 {offsets = [1, 0], sizes = [15, 64], strides = [1, 1]} : vector<16x64xf32> to vector<15x64xf32>
    %59 = tpu.concatenate %58, %55 in 0 : vector<15x64xf32>, vector<1x64xf32> -> vector<16x64xf32>
    %60 = tpu.iota {dimensions = array<i32: 0>} : vector<16x1xi32>
    %c8_i32 = arith.constant 8 : i32
    %c0_i32_12 = arith.constant 0 : i32
    %61 = arith.cmpi eq, %c8_i32, %c0_i32_12 : i32
    %c1_i32_13 = arith.constant 1 : i32
    %62 = arith.select %61, %c1_i32_13, %c8_i32 : i32
    %63 = vector.broadcast %62 : i32 to vector<16x1xi32>
    %64 = arith.remsi %60, %63 : vector<16x1xi32>
    %c0_i32_14 = arith.constant 0 : i32
    %65 = vector.broadcast %c0_i32_14 : i32 to vector<16x1xi32>
    %66 = arith.cmpi ne, %64, %65 : vector<16x1xi32>
    %c0_i32_15 = arith.constant 0 : i32
    %67 = vector.broadcast %c0_i32_15 : i32 to vector<16x1xi32>
    %68 = arith.cmpi slt, %64, %67 : vector<16x1xi32>
    %c0_i32_16 = arith.constant 0 : i32
    %69 = arith.cmpi slt, %62, %c0_i32_16 : i32
    %70 = vector.broadcast %69 : i1 to vector<16x1xi1>
    %71 = vector.broadcast %70 : vector<16x1xi1> to vector<16x1xi1>
    %72 = arith.xori %68, %71 : vector<16x1xi1>
    %73 = arith.andi %72, %66 : vector<16x1xi1>
    %74 = vector.broadcast %62 : i32 to vector<16x1xi32>
    %75 = arith.addi %64, %74 : vector<16x1xi32>
    %76 = arith.select %73, %75, %64 : vector<16x1xi1>, vector<16x1xi32>
    %c0_i32_17 = arith.constant 0 : i32
    %77 = vector.broadcast %c0_i32_17 : i32 to vector<16x1xi32>
    %78 = arith.cmpi eq, %76, %77 : vector<16x1xi32>
    %cst_18 = arith.constant 0.000000e+00 : f32
    %79 = vector.shape_cast %78 : vector<16x1xi1> to vector<16x1xi1>
    %80 = vector.broadcast %79 : vector<16x1xi1> to vector<16x64xi1>
    %81 = vector.broadcast %cst_18 : f32 to vector<16x64xf32>
    %82 = arith.select %80, %81, %57 : vector<16x64xi1>, vector<16x64xf32>
    %83 = tpu.concatenate %82, %54, %59 in 1 : vector<16x64xf32>, vector<16x64xf32>, vector<16x64xf32> -> vector<16x192xf32>
    %84 = vector.extract_strided_slice %83 {offsets = [0, 0], sizes = [1, 192], strides = [1, 1]} : vector<16x192xf32> to vector<1x192xf32>
    %85 = vector.extract_strided_slice %83 {offsets = [2, 0], sizes = [1, 192], strides = [1, 1]} : vector<16x192xf32> to vector<1x192xf32>
    %86 = vector.extract_strided_slice %83 {offsets = [4, 0], sizes = [1, 192], strides = [1, 1]} : vector<16x192xf32> to vector<1x192xf32>
    %87 = vector.extract_strided_slice %83 {offsets = [6, 0], sizes = [1, 192], strides = [1, 1]} : vector<16x192xf32> to vector<1x192xf32>
    %88 = vector.extract_strided_slice %83 {offsets = [8, 0], sizes = [1, 192], strides = [1, 1]} : vector<16x192xf32> to vector<1x192xf32>
    %89 = vector.extract_strided_slice %83 {offsets = [10, 0], sizes = [1, 192], strides = [1, 1]} : vector<16x192xf32> to vector<1x192xf32>
    %90 = vector.extract_strided_slice %83 {offsets = [12, 0], sizes = [1, 192], strides = [1, 1]} : vector<16x192xf32> to vector<1x192xf32>
    %91 = vector.extract_strided_slice %83 {offsets = [14, 0], sizes = [1, 192], strides = [1, 1]} : vector<16x192xf32> to vector<1x192xf32>
    %92 = tpu.concatenate %84, %85, %86, %87, %88, %89, %90, %91 in 0 : vector<1x192xf32>, vector<1x192xf32>, vector<1x192xf32>, vector<1x192xf32>, vector<1x192xf32>, vector<1x192xf32>, vector<1x192xf32>, vector<1x192xf32> -> vector<8x192xf32>
    %cst_19 = arith.constant 1.000000e+00 : f32
    %93 = vector.broadcast %cst_19 : f32 to vector<8x1xf32>
    %94 = tpu.concatenate %92, %93 in 1 : vector<8x192xf32>, vector<8x1xf32> -> vector<8x193xf32>
    %95 = arith.truncf %94 : vector<8x193xf32> to vector<8x193xbf16>
    %c0_20 = arith.constant 0 : index
    %c0_21 = arith.constant 0 : index
    %96 = vector.load %arg2[%c0_20, %c0_21] : memref<193x64xbf16, #tpu.memory_space<vmem>>, vector<193x64xbf16>
    %cst_22 = arith.constant dense<0.000000e+00> : vector<8x64xf32>
    %97 = tpu.matmul %95, %96, %cst_22 {dimension_numbers = #tpu.dot_dimension_numbers<[1], [0], [0], [1], [0, 0, 1, 1], [], []>} : vector<8x193xbf16>, vector<193x64xbf16>, vector<8x64xf32> -> vector<8x64xf32>
    %cst_23 = arith.constant 0.000000e+00 : f32
    %98 = vector.broadcast %cst_23 : f32 to vector<8x64xf32>
    %99 = arith.maximumf %97, %98 : vector<8x64xf32>
    %100 = vector.extract_strided_slice %99 {offsets = [0, 0], sizes = [1, 64], strides = [1, 1]} : vector<8x64xf32> to vector<1x64xf32>
    %101 = vector.extract_strided_slice %99 {offsets = [1, 0], sizes = [1, 64], strides = [1, 1]} : vector<8x64xf32> to vector<1x64xf32>
    %102 = vector.extract_strided_slice %99 {offsets = [2, 0], sizes = [1, 64], strides = [1, 1]} : vector<8x64xf32> to vector<1x64xf32>
    %103 = vector.extract_strided_slice %99 {offsets = [3, 0], sizes = [1, 64], strides = [1, 1]} : vector<8x64xf32> to vector<1x64xf32>
    %104 = tpu.concatenate %100, %101, %102, %103 in 1 : vector<1x64xf32>, vector<1x64xf32>, vector<1x64xf32>, vector<1x64xf32> -> vector<1x256xf32>
    %105 = vector.extract_strided_slice %99 {offsets = [4, 0], sizes = [1, 64], strides = [1, 1]} : vector<8x64xf32> to vector<1x64xf32>
    %106 = vector.extract_strided_slice %99 {offsets = [5, 0], sizes = [1, 64], strides = [1, 1]} : vector<8x64xf32> to vector<1x64xf32>
    %107 = vector.extract_strided_slice %99 {offsets = [6, 0], sizes = [1, 64], strides = [1, 1]} : vector<8x64xf32> to vector<1x64xf32>
    %108 = vector.extract_strided_slice %99 {offsets = [7, 0], sizes = [1, 64], strides = [1, 1]} : vector<8x64xf32> to vector<1x64xf32>
    %109 = tpu.concatenate %105, %106, %107, %108 in 1 : vector<1x64xf32>, vector<1x64xf32>, vector<1x64xf32>, vector<1x64xf32> -> vector<1x256xf32>
    %110 = tpu.concatenate %104, %109 in 0 : vector<1x256xf32>, vector<1x256xf32> -> vector<2x256xf32>
    %cst_24 = arith.constant 1.000000e+00 : f32
    %111 = vector.broadcast %cst_24 : f32 to vector<2x1xf32>
    %112 = tpu.concatenate %110, %111 in 1 : vector<2x256xf32>, vector<2x1xf32> -> vector<2x257xf32>
    %113 = arith.truncf %112 : vector<2x257xf32> to vector<2x257xbf16>
    %c0_25 = arith.constant 0 : index
    %c0_26 = arith.constant 0 : index
    %114 = vector.load %arg3[%c0_25, %c0_26] : memref<257x32xbf16, #tpu.memory_space<vmem>>, vector<257x32xbf16>
    %cst_27 = arith.constant dense<0.000000e+00> : vector<2x32xf32>
    %115 = tpu.matmul %113, %114, %cst_27 {dimension_numbers = #tpu.dot_dimension_numbers<[1], [0], [0], [1], [0, 0, 1, 1], [], []>} : vector<2x257xbf16>, vector<257x32xbf16>, vector<2x32xf32> -> vector<2x32xf32>
    %cst_28 = arith.constant 0.000000e+00 : f32
    %116 = vector.broadcast %cst_28 : f32 to vector<2x32xf32>
    %117 = arith.maximumf %115, %116 : vector<2x32xf32>
    %cst_29 = arith.constant 1.000000e+00 : f32
    %118 = vector.broadcast %cst_29 : f32 to vector<2x1xf32>
    %119 = tpu.concatenate %117, %118 in 1 : vector<2x32xf32>, vector<2x1xf32> -> vector<2x33xf32>
    %120 = arith.truncf %119 : vector<2x33xf32> to vector<2x33xbf16>
    %c0_30 = arith.constant 0 : index
    %c0_31 = arith.constant 0 : index
    %121 = vector.load %arg4[%c0_30, %c0_31] : memref<33x16xbf16, #tpu.memory_space<vmem>>, vector<33x16xbf16>
    %cst_32 = arith.constant dense<0.000000e+00> : vector<2x16xf32>
    %122 = tpu.matmul %120, %121, %cst_32 {dimension_numbers = #tpu.dot_dimension_numbers<[1], [0], [0], [1], [0, 0, 1, 1], [], []>} : vector<2x33xbf16>, vector<33x16xbf16>, vector<2x16xf32> -> vector<2x16xf32>
    %c0_33 = arith.constant 0 : index
    %c0_34 = arith.constant 0 : index
    %123 = vector.load %arg5[%c0_33, %c0_34] : memref<2x16xf32, #tpu.memory_space<vmem>>, vector<2x16xf32>
    tpu.vector_store %arg5[%c0_33, %c0_34], %122 {strides = array<i32>} : memref<2x16xf32, #tpu.memory_space<vmem>>, vector<2x16xf32>,
    return
  }
}

</mosaic_0001>

<bundles_post_ra>
// kernel: encoder_forward.1
= control target key start
LH: loop header
LB: loop body
LE: loop exit
PB: predicated region body
PF: predicated region fallthrough
CT: control target
= control target key end

     0   :  { %vm46_vm0 = vcmask 1046528   ;;  %v1132_v2 = vmov 0   ;;  %vm33_vm1 = vcmask 1040384   ;;  %vm207_vm2 = vcmask 1041408   ;;  %s1446_s0 = inlined_call_operand.vmem [shape: bf16[32,64], index: 0, kind: input, shape index: {}]   ;;  %s1447_s1 = inlined_call_operand.vmem [shape: bf16[193,64], index: 1, kind: input, shape index: {}]   ;;  %s1448_s2 = inlined_call_operand.vmem [shape: bf16[193,64], index: 2, kind: input, shape index: {}]   ;;  %s1449_s3 = inlined_call_operand.vmem [shape: bf16[257,32], index: 3, kind: input, shape index: {}]   ;;  %s1450_s4 = inlined_call_operand.vmem [shape: bf16[33,16], index: 4, kind: input, shape index: {}]   ;;  %s1451_s5 = inlined_call_operand.vmem [shape: f32[2,16], index: 5, kind: output, shape index: {}]  }
   0x1   :  { %v1014_v0 = vld [vmem:[%s1446_s0] sm:$0xff]   ;;  %v1021_v1 = vld [vmem:[%s1446_s0 + $0x8] sm:$0xff]   ;;  %351 = vmatprep.subr.bf16.mxu0 %v1132_v2  ;;  %602 = vmatprep.subr.bf16.mxu1 %v1132_v2  ;;  %s1133_s0 = smov 64   ;;  %v1088_v24 = vld [vmem:[%s1447_s1 + $0x10] sm:$0xff]   ;;  %vm210_vm3 = vcmask 1042432   ;;  %vm213_vm4 = vcmask 1043456  }
   0x2   :  { %v1175_v3 = vunpack.c.l.bf16 %v1014_v0  ;;  %v1016_v4 = vunpack.c.h.bf16 %v1014_v0  ;;  %v1019_v5 = vunpack.c.l.bf16 %v1021_v1  ;;  %v1020_v6 = vunpack.c.h.bf16 %v1021_v1  ;;  %v1086_v7 = vld [vmem:[%s1447_s1] sm:$0xff]   ;;  %v1087_v8 = vld [vmem:[%s1447_s1 + $0x8] sm:$0xff]   ;;  %v1089_v28 = vld [vmem:[%s1447_s1 + $0x18] sm:$0xff]  }
   0x3   :  { %352 = vmatpush1.bf16.msra.mxu0 %v1086_v7  ;;  %v1090_v34 = vld [vmem:[%s1447_s1 + $0x20] sm:$0xff]   ;;  %vm216_vm5 = vcmask 1044480   ;;  %v1091_v46 = vld [vmem:[%s1447_s1 + $0x28] sm:$0xff]   ;;  %vm219_vm6 = vcmask 1045504   ;;  %v1092_v56 = vld [vmem:[%s1447_s1 + $0x30] sm:$0xff]   ;;  %vm139_vm7 = vcmask 523264  }
   0x4   :  { %v35_v9 = vrot.slane %v1016_v4, 7  ;;  %v37_v10 = vrot.slane %v1019_v5, 7  ;;  %v39_v11 = vrot.slane %v1020_v6, 7  ;;  %v48_v12 = vrot.slane %v1016_v4, 1  ;;  %353 = vmatprep.subr.bf16.mxu0 %v1132_v2  ;;  %v1093_v62 = vld [vmem:[%s1447_s1 + $0x38] sm:$0xff]   ;;  %v1094_v63 = vld [vmem:[%s1447_s1 + $0x40] sm:$0xff]  }
   0x5   :  { %v50_v13 = vrot.slane %v1019_v5, 1  ;;  %v52_v14 = vrot.slane %v1020_v6, 1  ;;  %v1071_v15 = vpack.i.bf16 %v1019_v5, %v1175_v3  ;;  %v34_v16 = vrot.slane %v1175_v3, 7  ;;  %v1095_v0 = vld [vmem:[%s1447_s1 + $0x48] sm:$0xff]   ;;  %v1096_v1 = vld [vmem:[%s1447_s1 + $0x50] sm:$0xff]  }
   0x6   :  { %v47_v17 = vrot.slane %v1175_v3, 1  ;;  %v1188_v18 = vsel %vm33_vm1, %v35_v9, %v37_v10  ;;  %v1191_v19 = vsel %vm33_vm1, %v37_v10, %v39_v11  ;;  %v1076_v21 = vpack.i.bf16 %v1020_v6, %v1016_v4  ;;  %v1097_v4 = vld [vmem:[%s1447_s1 + $0x58] sm:$0xff]   ;;  %v1098_v5 = vld [vmem:[%s1447_s1 + $0x60] ss:$0 sps:$4 sm:$0x11]  }
   0x7   :  { %v53_v20 = vsel %vm46_vm0, %v50_v13, %v52_v14  ;;  %1072 = vrot.lane.b32.xlu0 %v1071_v15, %s1133_s0  ;;  %v1198_v22 = vsel %vm33_vm1, %v34_v16, %v35_v9  ;;  %354 = vmatpush1.bf16.msra.mxu0 %v1087_v8  ;;  %v51_v31 = vsel %vm46_vm0, %v48_v12, %v50_v13  ;;  %v57_v33 = vsel %vm46_vm0, %v52_v14, 0.0 }
   0x8   :  { %v49_v23 = vsel %vm46_vm0, %v47_v17, %v48_v12  ;;  %v176_v25 = vrot.slane %v53_v20, 1  ;;  %355 = vmatprep.subr.bf16.mxu0 %v1132_v2  ;;  %v180_v27 = vrot.slane %v53_v20, 2  ;;  %v159_v37 = vrot.slane %v51_v31, 4 }
   0x9   :  { %v146_v26 = vrot.slane %v49_v23, 1  ;;  %v150_v29 = vrot.slane %v49_v23, 2  ;;  %v154_v35 = vrot.slane %v49_v23, 3  ;;  %v184_v38 = vrot.slane %v53_v20, 3 }
   0xa   :  { %v225_v30 = vsel %vm33_vm1, %v53_v20, %v176_v25  ;;  %v190_v39 = vrot.slane %v57_v33, 4  ;;  %v163_v41 = vrot.slane %v51_v31, 5  ;;  %v167_v42 = vrot.slane %v51_v31, 6 }
   0xb   :  { %1077 = vrot.lane.b32.xlu0 %v1076_v21, %s1133_s0  ;;  %356 = vmatpush1.bf16.msra.mxu0 %v1088_v24  ;;  %v206_v32 = vsel %vm33_vm1, %v49_v23, %v146_v26  ;;  %v227_v36 = vsel %vm207_vm2, %v225_v30, %v180_v27  ;;  %v171_v43 = vrot.slane %v51_v31, 7  ;;  %v194_v44 = vrot.slane %v57_v33, 5 }
   0xc   :  { %357 = vmatprep.subr.bf16.mxu0 %v1132_v2  ;;  %v209_v40 = vsel %vm207_vm2, %v206_v32, %v150_v29  ;;  %v198_v45 = vrot.slane %v57_v33, 6  ;;  %v202_v47 = vrot.slane %v57_v33, 7  ;;  %v229_v49 = vsel %vm210_vm3, %v227_v36, %v184_v38 }
   0xd   :  { %v212_v48 = vsel %vm210_vm3, %v209_v40, %v154_v35  ;;  %v231_v51 = vsel %vm213_vm4, %v229_v49, %v190_v39  ;;  %vm342_vm8 = vcmask 531456   ;;  %v1266_v6 = vsel %vm33_vm1, 65535, %v1132_v2 }
   0xe   :  { %v215_v50 = vsel %vm213_vm4, %v212_v48, %v159_v37  ;;  %v233_v53 = vsel %vm216_vm5, %v231_v51, %v194_v44  ;;  %v349_v7 = vand.u32 %v1098_v5, %v1266_v6  ;;  %v58_v8 = vlaneseq }
   0xf   :  { %358 = vmatpush1.bf16.msra.mxu0 %v1089_v28  ;;  %v218_v52 = vsel %vm216_vm5, %v215_v50, %v163_v41  ;;  %v235_v55 = vsel %vm219_vm6, %v233_v53, %v198_v45  ;;  %v45_v13 = vsel %vm33_vm1, 0.0, %v34_v16  ;;  %vm1135_vm13 = vmmov 0  }
  0x10   :  { %359 = vmatprep.subr.bf16.mxu0 %v1132_v2  ;;  %v221_v54 = vsel %vm219_vm6, %v218_v52, %v167_v42  ;;  %v237_v58 = vsel %vm46_vm0, %v235_v55, %v202_v47  ;;  %v1270_v9 = vshrl.u32 %v58_v8, 7  ;;  %v1100_v55 = vld [vmem:[%s1448_s2 + $0x8] sm:$0xff]   ;;  %vm799_vm14 = vcmask 7168  }
  0x11   :  { %v223_v57 = vsel %vm46_vm0, %v221_v54, %v171_v43  ;;  %v239_v60 = vsel %vm139_vm7, %v237_v58, 1.0  ;;  %v1099_v54 = vld [vmem:[%s1448_s2] sm:$0xff]   ;;  %vm887_vm15 = vcmask 261120  }
  0x12   :  { %v238_v59 = vsel %vm139_vm7, %v223_v57, 1.0  ;;  %v61_v10 = vadd.s32 16, %v1270_v9  ;;  %v67_v11 = vand.u32 15, %v1270_v9  ;;  %603 = vmatpush1.bf16.msra.mxu1 %v1099_v54  ;;  %v1102_v57 = vld [vmem:[%s1448_s2 + $0x18] sm:$0xff]   ;;  %v1103_v58 = vld [vmem:[%s1448_s2 + $0x20] sm:$0xff]  }
  0x13   :  { %360 = vmatpush1.bf16.msra.mxu0 %v1090_v34  ;;  %v241_v61 = vpack.c.bf16 %v239_v60, %v238_v59  ;;  %604 = vmatprep.subr.bf16.mxu1 %v1132_v2  ;;  %v1104_v59 = vld [vmem:[%s1448_s2 + $0x28] sm:$0xff]   ;;  %v1105_v60 = vld [vmem:[%s1448_s2 + $0x30] sm:$0xff]  }
  0x14   :  { %361 = vmatprep.subr.bf16.mxu0 %v1132_v2  ;;  %v81_v12 = vand.u32 15, %v61_v10  ;;  %vm111_vm9 = vcmp.eq.s32.totalorder %v67_v11, 0 }
  0x15   :  { %976 = vmatprep.mubr.msk.bf16.mxu0 %vm342_vm8, %v241_v61  ;;  %v123_v17 = vsel %vm111_vm9, 0.0, %v45_v13  ;;  %v1106_v61 = vld [vmem:[%s1448_s2 + $0x38] sm:$0xff]  }
  0x16   :  { %vm113_vm10 = vcmp.eq.s32.totalorder %v81_v12, 0  ;;  %605 = vmatpush1.bf16.msra.mxu1 %v1100_v55 }
  0x17   :  { %362 = vmatpush1.bf16.msra.mxu0 %v1091_v46  ;;  %v125_v14 = vsel %vm113_vm10, 0.0, %v1188_v18  ;;  %606 = vmatprep.subr.bf16.mxu1 %v1132_v2 }
  0x18   :  { %363 = vmatprep.subr.bf16.mxu0 %v1132_v2 }
  0x1b   :  { %364 = vmatpush1.bf16.msra.mxu0 %v1092_v56  ;;  %v1101_v56 = vld [vmem:[%s1448_s2 + $0x10] sm:$0xff]  }
  0x1c   :  { %365 = vmatprep.subr.bf16.mxu0 %v1132_v2  ;;  %607 = vmatpush1.bf16.msra.mxu1 %v1101_v56 }
  0x1d   :  { %608 = vmatprep.subr.bf16.mxu1 %v1132_v2 }
  0x1f   :  { %366 = vmatpush1.bf16.msra.mxu0 %v1093_v62  ;;  %v1107_v62 = vld [vmem:[%s1448_s2 + $0x40] sm:$0xff]  }
  0x20   :  { %367 = vmatprep.subr.bf16.mxu0 %v1132_v2  ;;  %609 = vmatpush1.bf16.msra.mxu1 %v1102_v57 }
  0x21   :  { %610 = vmatprep.subr.bf16.mxu1 %v1132_v2 }
  0x23   :  { %368 = vmatpush1.bf16.msra.mxu0 %v1094_v63  ;;  %v1108_v63 = vld [vmem:[%s1448_s2 + $0x48] sm:$0xff]  }
  0x24   :  { %369 = vmatprep.subr.bf16.mxu0 %v1132_v2  ;;  %611 = vmatpush1.bf16.msra.mxu1 %v1103_v58 }
  0x25   :  { %612 = vmatprep.subr.bf16.mxu1 %v1132_v2 }
  0x27   :  { %370 = vmatpush1.bf16.msra.mxu0 %v1095_v0  ;;  %v1109_v0 = vld [vmem:[%s1448_s2 + $0x50] sm:$0xff]  }
  0x28   :  { %371 = vmatprep.subr.bf16.mxu0 %v1132_v2  ;;  %613 = vmatpush1.bf16.msra.mxu1 %v1104_v59  ;;  %v1112_v59 = vld [vmem:[%s1449_s3 + $0x40] sm:$0xff]  }
  0x29   :  { %614 = vmatprep.subr.bf16.mxu1 %v1132_v2 }
  0x2b   :  { %372 = vmatpush1.bf16.msra.mxu0 %v1096_v1  ;;  %v1110_v1 = vld [vmem:[%s1448_s2 + $0x58] sm:$0xff]  }
  0x2c   :  { %373 = vmatprep.subr.bf16.mxu0 %v1132_v2  ;;  %615 = vmatpush1.bf16.msra.mxu1 %v1105_v60  ;;  %v1113_v60 = vld [vmem:[%s1449_s3] sm:$0xff]  }
  0x2d   :  { %616 = vmatprep.subr.bf16.mxu1 %v1132_v2 }
  0x2f   :  { %374 = vmatpush1.bf16.msra.mxu0 %v1097_v4  ;;  %v1111_v4 = vld [vmem:[%s1448_s2 + $0x60] ss:$0 sps:$4 sm:$0x11]  }
  0x30   :  { %375 = vmatprep.subr.bf16.mxu0 %v1132_v2  ;;  %617 = vmatpush1.bf16.msra.mxu1 %v1106_v61  ;;  %v600_v5 = vand.u32 %v1111_v4, %v1266_v6  ;;  %v1114_v61 = vld [vmem:[%s1449_s3 + $0x48] sm:$0xff]   ;;  %v1119_v4 = vld [vmem:[%s1449_s3 + $0x18] sm:$0xff]  }
  0x31   :  { %618 = vmatprep.subr.bf16.mxu1 %v1132_v2 }
  0x33   :  { %376 = vmatpush1.bf16.msra.mxu0 %v349_v7 }
  0x34   :  { %619 = vmatpush1.bf16.msra.mxu1 %v1107_v62  ;;  %1022 = vmatprep.subr.bf16.mxu0 %v1112_v59  ;;  %v1115_v62 = vld [vmem:[%s1449_s3 + $0x8] sm:$0xff]  }
  0x35   :  { %620 = vmatprep.subr.bf16.mxu1 %v1132_v2 }
  0x38   :  { %621 = vmatpush1.bf16.msra.mxu1 %v1108_v63  ;;  %v1116_v63 = vld [vmem:[%s1449_s3 + $0x50] sm:$0xff]  }
  0x39   :  { %622 = vmatprep.subr.bf16.mxu1 %v1132_v2 }
  0x3c   :  { %623 = vmatpush1.bf16.msra.mxu1 %v1109_v0  ;;  %v1117_v0 = vld [vmem:[%s1449_s3 + $0x10] sm:$0xff]  }
  0x3d   :  { %624 = vmatprep.subr.bf16.mxu1 %v1132_v2 }
  0x40   :  { %625 = vmatpush1.bf16.msra.mxu1 %v1110_v1  ;;  %v1118_v1 = vld [vmem:[%s1449_s3 + $0x58] sm:$0xff]  }
  0x41   :  { %626 = vmatprep.subr.bf16.mxu1 %v1132_v2 }
  0x44   :  { %627 = vmatpush1.bf16.msra.mxu1 %v600_v5  ;;  %v1120_v5 = vld [vmem:[%s1449_s3 + $0x60] sm:$0xff]  }
  0x79   :  { %v1073_v15 = vpop.permute.xlu0 %1072 }
  0x7a   :  { %v1075_v20 = vunpack.i.h.bf16 %v1073_v15  ;;  %v1074_v21 = vunpack.i.l.bf16 %v1073_v15 }
  0x7c   :  { %v142_v23 = vsel %vm139_vm7, %v125_v14, %v1075_v20  ;;  %v140_v24 = vsel %vm139_vm7, %v123_v17, %v1074_v21 }
  0x7d   :  { %v175_v25 = vrot.slane %v142_v23, 1  ;;  %v179_v26 = vrot.slane %v142_v23, 2  ;;  %v145_v27 = vrot.slane %v140_v24, 1  ;;  %v1078_v28 = vpop.permute.xlu0 %1077  ;;  %v149_v29 = vrot.slane %v140_v24, 2 }
  0x7e   :  { %v1080_v30 = vunpack.i.h.bf16 %v1078_v28  ;;  %v1079_v31 = vunpack.i.l.bf16 %v1078_v28  ;;  %v183_v3 = vrot.slane %v142_v23, 3  ;;  %v153_v36 = vrot.slane %v140_v24, 3 }
  0x7f   :  { %v224_v16 = vsel %vm33_vm1, %v142_v23, %v175_v25  ;;  %v205_v18 = vsel %vm33_vm1, %v140_v24, %v145_v27 }
  0x80   :  { %v226_v32 = vsel %vm207_vm2, %v224_v16, %v179_v26  ;;  %v208_v33 = vsel %vm207_vm2, %v205_v18, %v149_v29  ;;  %v143_v34 = vsel %vm139_vm7, %v1191_v19, %v1080_v30  ;;  %v141_v35 = vsel %vm139_vm7, %v1198_v22, %v1079_v31 }
  0x81   :  { %v189_v37 = vrot.slane %v143_v34, 4  ;;  %v193_v38 = vrot.slane %v143_v34, 5  ;;  %v158_v39 = vrot.slane %v141_v35, 4  ;;  %v162_v40 = vrot.slane %v141_v35, 5 }
  0x82   :  { %v211_v41 = vsel %vm210_vm3, %v208_v33, %v153_v36  ;;  %v228_v42 = vsel %vm210_vm3, %v226_v32, %v183_v3  ;;  %v197_v43 = vrot.slane %v143_v34, 6  ;;  %v166_v44 = vrot.slane %v141_v35, 6 }
  0x83   :  { %v214_v45 = vsel %vm213_vm4, %v211_v41, %v158_v39  ;;  %v230_v46 = vsel %vm213_vm4, %v228_v42, %v189_v37  ;;  %v170_v47 = vrot.slane %v141_v35, 7  ;;  %v201_v19 = vrot.slane %v143_v34, 7 }
  0x84   :  { %v217_v48 = vsel %vm216_vm5, %v214_v45, %v162_v40  ;;  %v232_v22 = vsel %vm216_vm5, %v230_v46, %v193_v38  ;;  %v412_v37 = vand.u32 7, %v1270_v9  ;;  %v60_v38 = vadd.s32 8, %v1270_v9 }
  0x85   :  { %v220_v49 = vsel %vm219_vm6, %v217_v48, %v166_v44  ;;  %v234_v50 = vsel %vm219_vm6, %v232_v22, %v197_v43 }
  0x86   :  { %v222_v51 = vsel %vm46_vm0, %v220_v49, %v170_v47  ;;  %v236_v52 = vsel %vm46_vm0, %v234_v50, %v201_v19  ;;  %vm432_vm11 = vcmp.eq.s32.totalorder %v412_v37, 0  ;;  %v419_v40 = vand.u32 7, %v60_v38 }
  0x87   :  { %v240_v53 = vpack.c.bf16 %v236_v52, %v222_v51 }
  0x88   :  { %vm433_vm12 = vcmp.eq.s32.totalorder %v419_v40, 0 }
  0x89   :  { %384 = vmatmul.mubr.bf16.vlgmr.msra.gmra.mrb[0].mxu0 %v240_v53 }
  0x8a   :  { %1023 = vmatpush3.bf16.msra.mxu0 %v1113_v60 }
  0x8b   :  { %1024 = vmatprep.subr.bf16.mxu0 %v1114_v61 }
  0x8e   :  { %1025 = vmatpush3.bf16.msra.mxu0 %v1115_v62 }
  0x8f   :  { %1026 = vmatprep.subr.bf16.mxu0 %v1116_v63 }
  0x92   :  { %1027 = vmatpush3.bf16.msra.mxu0 %v1117_v0 }
  0x93   :  { %1028 = vmatprep.subr.bf16.mxu0 %v1118_v1 }
  0x96   :  { %1029 = vmatpush3.bf16.msra.mxu0 %v1119_v4 }
  0x97   :  { %1030 = vmatprep.subr.bf16.mxu0 %v1120_v5 }
 0x15c   :  { %v385_v7 = vpop.f32.mrb[0].mxu0 }
 0x15d   :  { %v392_v8 = vmax.f32 %v385_v7, 0.0  ;;  %v387_v10 = vpop.f32.mrb[1].mxu0  ;;  %v1121_v7 = vld [vmem:[%s1449_s3 + $0x20] sm:$0xff]  }
 0x15e   :  { %v388_v11 = vpop.f32.mrb[2].mxu0  ;;  %1031 = vmatpush3.bf16.msra.mxu0 %v1121_v7  ;;  %v1123_v10 = vld [vmem:[%s1449_s3 + $0x28] sm:$0xff]  }
 0x15f   :  { %v393_v12 = vmax.f32 %v388_v11, 0.0  ;;  %440 = vrot.lane.b32.xlu1 %v392_v8, %s1133_s0  ;;  %v390_v13 = vpop.f32.mrb[3].mxu0  ;;  %v396_v14 = vrot.slane %v392_v8, 7  ;;  %v402_v15 = vrot.slane %v392_v8, 1  ;;  %v1122_v8 = vld [vmem:[%s1449_s3 + $0x68] sm:$0xff]   ;;  %v1124_v11 = vld [vmem:[%s1449_s3 + $0x70] sm:$0xff]  }
 0x160   :  { %1032 = vmatprep.subr.bf16.mxu0 %v1122_v8  ;;  %v1126_v13 = vld [vmem:[%s1449_s3 + $0x80] ss:$0 sps:$4 sm:$0x11]  }
 0x161   :  { %v397_v17 = vrot.slane %v393_v12, 7  ;;  %v403_v20 = vrot.slane %v393_v12, 1  ;;  %v401_v39 = vsel %vm33_vm1, 0.0, %v396_v14 }
 0x162   :  { %v438_v42 = vsel %vm432_vm11, 0.0, %v401_v39  ;;  %1033 = vmatpush3.bf16.msra.mxu0 %v1123_v10  ;;  %v1129_v39 = vld [vmem:[%s1450_s4] sm:$0xff]  }
 0x163   :  { %v404_v21 = vsel %vm46_vm0, %v402_v15, %v403_v20  ;;  %442 = vrot.lane.b32.xlu1 %v393_v12, %s1133_s0  ;;  %v398_v2 = vsel %vm33_vm1, %v396_v14, %v397_v17  ;;  %v407_v23 = vsel %vm46_vm0, %v403_v20, 0.0  ;;  %v1125_v12 = vld [vmem:[%s1449_s3 + $0x30] sm:$0xff]   ;;  %1034 = vmatprep.subr.bf16.mxu0 %v1124_v11  ;;  %v1127_v14 = vld [vmem:[%s1449_s3 + $0x78] sm:$0xff]   ;;  %v804_v15 = vand.u32 %v1126_v13, %v1266_v6 }
 0x164   :  { %v450_v24 = vrot.slane %v404_v21, 1  ;;  %v454_v25 = vrot.slane %v404_v21, 2  ;;  %v458_v26 = vrot.slane %v404_v21, 3  ;;  %v464_v28 = vrot.slane %v407_v23, 4  ;;  %v1128_v17 = vld [vmem:[%s1449_s3 + $0x38] sm:$0xff]  }
 0x165   :  { %v468_v30 = vrot.slane %v407_v23, 5  ;;  %v472_v3 = vrot.slane %v407_v23, 6  ;;  %v476_v18 = vrot.slane %v407_v23, 7  ;;  %v439_v48 = vsel %vm433_vm12, 0.0, %v398_v2 }
 0x166   :  { %v480_v27 = vsel %vm33_vm1, %v404_v21, %v450_v24  ;;  %1035 = vmatpush3.bf16.msra.mxu0 %v1125_v12  ;;  %v1134_v21 = vmov 0.0  }
 0x167   :  { %v482_v29 = vsel %vm207_vm2, %v480_v27, %v454_v25  ;;  %1050 = vmatprep.subr.bf16.mxu1 %v1134_v21  ;;  %1036 = vmatprep.subr.bf16.mxu0 %v1127_v14 }
 0x168   :  { %v484_v31 = vsel %vm210_vm3, %v482_v29, %v458_v26  ;;  %v1136_v29 = vmov 1.0|1.0  }
 0x169   :  { %v486_v16 = vsel %vm213_vm4, %v484_v31, %v464_v28 }
 0x16a   :  { %v488_v32 = vsel %vm216_vm5, %v486_v16, %v468_v30  ;;  %1037 = vmatpush3.bf16.msra.mxu0 %v1128_v17 }
 0x16b   :  { %v490_v33 = vsel %vm219_vm6, %v488_v32, %v472_v3 }
 0x16c   :  { %v492_v34 = vsel %vm46_vm0, %v490_v33, %v476_v18 }
 0x16d   :  { %v493_v35 = vsel %vm139_vm7, %v492_v34, 1.0 }
 0x16e   :  { %v495_v36 = vpack.c.bf16 %v493_v35, %v493_v35 }
 0x170   :  { %990 = vmatprep.mubr.msk.bf16.mxu1 %vm342_vm8, %v495_v36 }
 0x1d1   :  { %v441_v41 = vpop.permute.xlu1 %440 }
 0x1d2   :  { %v446_v43 = vsel %vm139_vm7, %v438_v42, %v441_v41  ;;  %v1130_v42 = vld [vmem:[%s1450_s4 + $0x8] sm:$0xff]  }
 0x1d3   :  { %v449_v44 = vrot.slane %v446_v43, 1  ;;  %v453_v45 = vrot.slane %v446_v43, 2  ;;  %v457_v46 = vrot.slane %v446_v43, 3 }
 0x1d5   :  { %v479_v47 = vsel %vm33_vm1, %v446_v43, %v449_v44  ;;  %v443_v19 = vpop.permute.xlu1 %442 }
 0x1d6   :  { %v481_v22 = vsel %vm207_vm2, %v479_v47, %v453_v45  ;;  %v447_v9 = vsel %vm139_vm7, %v439_v48, %v443_v19  ;;  %v1131_v45 = vld [vmem:[%s1450_s4 + $0x10] ss:$0 sps:$4 sm:$0x11]  }
 0x1d7   :  { %v483_v49 = vsel %vm210_vm3, %v481_v22, %v457_v46  ;;  %v463_v50 = vrot.slane %v447_v9, 4  ;;  %v467_v51 = vrot.slane %v447_v9, 5  ;;  %v471_v52 = vrot.slane %v447_v9, 6 }
 0x1d8   :  { %v475_v54 = vrot.slane %v447_v9, 7  ;;  %v915_v46 = vand.u32 %v1131_v45, %v1266_v6 }
 0x1d9   :  { %v485_v53 = vsel %vm213_vm4, %v483_v49, %v463_v50 }
 0x1da   :  { %v487_v55 = vsel %vm216_vm5, %v485_v53, %v467_v51 }
 0x1db   :  { %v489_v56 = vsel %vm219_vm6, %v487_v55, %v471_v52 }
 0x1dc   :  { %v491_v57 = vsel %vm46_vm0, %v489_v56, %v475_v54  ;;  %vm910_vm0 = vcmask 269312  }
 0x1dd   :  { %v494_v58 = vpack.c.bf16 %v491_v57, %v491_v57 }
 0x1df   :  { %635 = vmatmul.mubr.bf16.vlgmr.msra.gmra.mrb[0].mxu1 %v494_v58 }
 0x1e0   :  { %1051 = vmatpush3.bf16.msra.mxu1 %v804_v15  ;;  %1052 = vmatprep.mubr.msk.bf16.mxu1 %vm1135_vm13, %v1134_v21 }
 0x1e1   :  { %1056 = vmatprep.subr.bf16.mxu1 %v1134_v21 }
 0x1e7   :  { %1053 = vmatmul.mubr.msk.bf16.vlgmr.msra.gmra.mrb[4].mxu1 %vm799_vm14, %v1136_v29 }
 0x1e8   :  { %1062 = vmatprep.mubr.msk.bf16.mxu1 %vm1135_vm13, %v1134_v21  ;;  %1057 = vmatpush3.bf16.msra.mxu1 %v1129_v39 }
 0x1e9   :  { %1058 = vmatprep.subr.bf16.mxu1 %v1134_v21 }
 0x1ec   :  { %1059 = vmatpush3.bf16.msra.mxu1 %v1130_v42 }
 0x1ed   :  { %1060 = vmatprep.subr.bf16.mxu1 %v1134_v21 }
 0x1f0   :  { %1061 = vmatpush3.bf16.msra.mxu1 %v915_v46 }
 0x2b2   :  { %v636_v20 = vpop.f32.mrb[0].mxu1 }
 0x2b3   :  { %v642_v2 = vmax.f32 %v636_v20, 0.0  ;;  %v638_v23 = vpop.f32.mrb[1].mxu1 }
 0x2b4   :  { %v639_v24 = vpop.f32.mrb[2].mxu1 }
 0x2b5   :  { %v640_v25 = vpop.f32.mrb[3].mxu1  ;;  %v644_v26 = vrot.slane %v642_v2, 1  ;;  %v650_v27 = vrot.slane %v642_v2, 3  ;;  %v648_v31 = vrot.slane %v642_v2, 2 }
 0x2b7   :  { %v1081_v28 = vpack.i.bf16 %v644_v26, %v650_v27 }
 0x2b9   :  { %1082 = vrot.lane.b32.xlu0 %v1081_v28, %s1133_s0 }
 0x2ba   :  { %v880_v40 = vpop.f32.mrb[4].mxu1 }
 0x2bb   :  { %v1054_v41 = vpop.f32.mrb[5].mxu1 }
 0x2bc   :  { %v883_v43 = vpop.f32.mrb[6].mxu1 }
 0x2bd   :  { %v1055_v44 = vpop.f32.mrb[7].mxu1 }
 0x32b   :  { %v1083_v30 = vpop.permute.xlu0 %1082 }
 0x32c   :  { %v1085_v3 = vunpack.i.h.bf16 %v1083_v30  ;;  %v1084_v16 = vunpack.i.l.bf16 %v1083_v30 }
 0x32e   :  { %v654_v18 = vsel %vm139_vm7, %v642_v2, %v1085_v3  ;;  %v655_v32 = vsel %vm139_vm7, %v648_v31, %v1084_v16 }
 0x32f   :  { %v658_v33 = vrot.slane %v654_v18, 3  ;;  %v659_v34 = vrot.slane %v655_v32, 3 }
 0x331   :  { %v662_v35 = vsel %vm33_vm1, %v654_v18, %v658_v33  ;;  %v663_v36 = vsel %vm33_vm1, %v655_v32, %v659_v34  ;;  %vm957_vm1 = vcmask 123904  }
 0x332   :  { %v665_v37 = vpack.c.bf16 %v663_v36, %v663_v36  ;;  %v664_v38 = vpack.c.bf16 %v662_v35, %v662_v35 }
 0x334   :  { %838 = vmatprep.mubr.bf16.mxu0 %v665_v37 }
 0x335   :  { %839 = vmatmul.mubr.bf16.vlgmr.msra.gmra.mrb[4].mxu0 %v664_v38 }
 0x408   :  { %v1038_v47 = vpop.f32.mrb[4].mxu0 }
 0x409   :  { %v1039_v19 = vpop.f32.mrb[5].mxu0 }
 0x40a   :  { %v1040_v48 = vadd.f32 %v1039_v19, %v1038_v47  ;;  %v1041_v22 = vpop.f32.mrb[6].mxu0 }
 0x40b   :  { %v1042_v9 = vpop.f32.mrb[7].mxu0 }
 0x40c   :  { %v881_v49 = vadd.f32 %v1040_v48, %v880_v40 }
 0x40e   :  { %v886_v50 = vmax.f32 %v881_v49, 0.0 }
 0x410   :  { %v888_v51 = vsel %vm887_vm15, %v886_v50, 1.0 }
 0x411   :  { %v889_v52 = vpack.c.bf16 %v888_v51, %v888_v51 }
 0x413   :  { %1063 = vmatmul.mubr.msk.bf16.vlgmr.msra.gmra.mrb[8].mxu1 %vm910_vm0, %v889_v52 }
 0x4e6   :  { %v951_v53 = vpop.f32.mrb[8].mxu1 }
 0x4e7   :  { %958 = vst.msk [vmem:[%s1451_s5] sm:$0x3] %vm957_vm1, %v951_v53  ;;  %v1064_v6 = vpop.f32.mrb[9].mxu1 }
 0x4e8   :  { %v954_v54 = vpop.f32.mrb[10].mxu1 }
 0x4e9   :  { %v1065_v55 = vpop.f32.mrb[11].mxu1 }

</bundles_post_ra>
